<compile_context>
chip_gen: v5e
topology: v5e:2x2
jax: 0.10.0
libtpu: 0.0.40
codegen_flags: <defaults>
</compile_context>

<pallas_src>
import functools

import jax
import jax.numpy as jnp
from jax.experimental import pallas as pl
from jax.experimental.pallas import tpu as pltpu

N_STATES = 4     # CartPole-v1 observation_space.shape[0]
N_ACTIONS = 2    # CartPole-v1 action_space.n
HIDDEN = 64
OUT_PAD = 128    # lane-dense padded output width


def _round_up(n, m):
    return ((n + m - 1) // m) * m


def dqn_kernel(x_ref, w1_ref, b1_ref, w2_ref, b2_ref, o_ref):
    # x_ref: [TM, 4] bf16, w1_ref: [4, 64] bf16, b1_ref: [1, 64] f32,
    # w2_ref: [64, 128] bf16 (zero-padded), b2_ref: [1, 128] f32 (zero-padded),
    # o_ref: [TM, 128] f32 (lane-dense stores).
    x = x_ref[...]
    # Layer 1: MXU bf16 matmul, f32 accumulate; bias + ReLU on the VPU in f32.
    h = jnp.dot(x, w1_ref[...], preferred_element_type=jnp.float32)
    h = jnp.maximum(h + b1_ref[...], 0.0)
    # Layer 2: cast activations back to bf16 for the MXU, accumulate f32.
    h = h.astype(w2_ref.dtype)
    o = jnp.dot(h, w2_ref[...], preferred_element_type=jnp.float32)
    o_ref[...] = o + b2_ref[...]


@functools.partial(jax.jit, static_argnames=("tile_m", "compute_dtype"))
def dqn_forward(x, w1, b1, w2, b2, *, tile_m=1024, compute_dtype=jnp.bfloat16):
    """Q-values for a batch of states.  x: [B, 4] f32 -> [B, 2] f32."""
    B = x.shape[0]

    # Batch tile: multiple of 256, clamped so tiny batches use a single small tile.
    tm = min(tile_m, _round_up(max(B, 1), 256))
    padded_b = _round_up(B, tm)
    if padded_b != B:
        x = jnp.pad(x, ((0, padded_b - B), (0, 0)))

    # Lane-dense output path: zero-pad layer-2 weights/bias to 128 columns.
    w2p = jnp.pad(w2, ((0, 0), (0, OUT_PAD - w2.shape[1])))
    b2p = jnp.pad(b2, ((0, 0), (0, OUT_PAD - b2.shape[1])))

    # bf16 matmul operands (halves HBM traffic on the dominant x stream);
    # biases stay f32 since bias/ReLU run in f32 on the VPU.
    xc = x.astype(compute_dtype)
    w1c = w1.astype(compute_dtype)
    w2c = w2p.astype(compute_dtype)

    grid = (padded_b // tm,)
    vmem = pltpu.MemorySpace.VMEM

    out = pl.pallas_call(
        dqn_kernel,
        out_shape=jax.ShapeDtypeStruct((padded_b, OUT_PAD), jnp.float32),
        grid=grid,
        in_specs=[
            # Batch-tiled input: double-buffered DMA across grid steps.
            pl.BlockSpec((tm, N_STATES), lambda i: (i, 0), memory_space=vmem),
            # Weights / biases: constant index_map -> VMEM-resident across steps.
            pl.BlockSpec((N_STATES, HIDDEN), lambda i: (0, 0), memory_space=vmem),
            pl.BlockSpec((1, HIDDEN), lambda i: (0, 0), memory_space=vmem),
            pl.BlockSpec((HIDDEN, OUT_PAD), lambda i: (0, 0), memory_space=vmem),
            pl.BlockSpec((1, OUT_PAD), lambda i: (0, 0), memory_space=vmem),
        ],
        out_specs=pl.BlockSpec((tm, OUT_PAD), lambda i: (i, 0), memory_space=vmem),
        compiler_params=pltpu.CompilerParams(
            dimension_semantics=("parallel",),  # dual-TC on v7x; no-op on v5e/v6e
        ),
    )(xc, w1c, b1, w2c, b2p)

    return out[:B, :N_ACTIONS]


def init_params(key):
    # Deterministic init mimicking PyTorch's default Linear init:
    # U(-1/sqrt(fan_in), 1/sqrt(fan_in)) for both weight and bias.
    k1, k2, k3, k4 = jax.random.split(key, 4)
    bound1 = 1.0 / jnp.sqrt(jnp.float32(N_STATES))
    bound2 = 1.0 / jnp.sqrt(jnp.float32(HIDDEN))
    w1 = jax.random.uniform(k1, (N_STATES, HIDDEN), jnp.float32, -bound1, bound1)
    b1 = jax.random.uniform(k2, (1, HIDDEN), jnp.float32, -bound1, bound1)
    w2 = jax.random.uniform(k3, (HIDDEN, N_ACTIONS), jnp.float32, -bound2, bound2)
    b2 = jax.random.uniform(k4, (1, N_ACTIONS), jnp.float32, -bound2, bound2)
    return w1, b1, w2, b2


def reference_matched(x, w1, b1, w2, b2, compute_dtype=jnp.bfloat16):
    # Pure-JAX reference with the same bf16-operand / f32-accumulate recipe.
    xc = x.astype(compute_dtype)
    w1c = w1.astype(compute_dtype)
    w2c = w2.astype(compute_dtype)
    h = jnp.dot(xc, w1c, preferred_element_type=jnp.float32) + b1
    h = jnp.maximum(h, 0.0).astype(compute_dtype)
    return jnp.dot(h, w2c, preferred_element_type=jnp.float32) + b2


if __name__ == "__main__":
    key = jax.random.PRNGKey(0)
    kx, kp = jax.random.split(key)

    # Small correctness smoke test (the wrapper pads this to one 256-row tile).
    B = 8
    x = jax.random.normal(kx, (B, N_STATES), jnp.float32)
    w1, b1, w2, b2 = init_params(kp)

    out = dqn_forward(x, w1, b1, w2, b2)
    out = jax.block_until_ready(out)
    assert out.shape == (B, N_ACTIONS)

    # Exact-recipe reference (bf16 operands, f32 accumulation).
    ref = reference_matched(x, w1, b1, w2, b2)
    assert jnp.allclose(out, ref, atol=1e-3, rtol=1e-3), (out, ref)

    # Loose sanity check against the full-precision f32 forward pass.
    ref_f32 = jnp.maximum(x @ w1 + b1, 0.0) @ w2 + b2
    assert jnp.allclose(out, ref_f32, atol=0.1, rtol=0.1), (out, ref_f32)

    print("KERNEL_OK")
</pallas_src>

<mosaic_0001>
module attributes {stable_mosaic.version = 11 : i64} {
  func.func @dqn_kernel(%arg0: i32, %arg1: memref<256x4xbf16, #tpu.memory_space<vmem>>, %arg2: memref<4x64xbf16, #tpu.memory_space<vmem>>, %arg3: memref<1x64xf32, #tpu.memory_space<vmem>>, %arg4: memref<64x128xbf16, #tpu.memory_space<vmem>>, %arg5: memref<1x128xf32, #tpu.memory_space<vmem>>, %arg6: memref<256x128xf32, #tpu.memory_space<vmem>>) attributes {dimension_semantics = [#tpu.dimension_semantics<parallel>], iteration_bounds = array<i64: 1>, scalar_prefetch = 0 : i64, scratch_operands = 0 : i64, tpu.core_type = #tpu.core_type<tc>, window_params = [{transform_indices = @transform_0, window_bounds = array<i64: 256, 4>}, {pipeline_mode = #tpu.pipeline_mode<synchronous>, transform_indices = @transform_1, window_bounds = array<i64: 4, 64>}, {pipeline_mode = #tpu.pipeline_mode<synchronous>, transform_indices = @transform_2, window_bounds = array<i64: 1, 64>}, {pipeline_mode = #tpu.pipeline_mode<synchronous>, transform_indices = @transform_3, window_bounds = array<i64: 64, 128>}, {pipeline_mode = #tpu.pipeline_mode<synchronous>, transform_indices = @transform_4, window_bounds = array<i64: 1, 128>}, {transform_indices = @transform_5, window_bounds = array<i64: 256, 128>}]} {
    %c0 = arith.constant 0 : index
    %c0_0 = arith.constant 0 : index
    %0 = vector.load %arg1[%c0, %c0_0] : memref<256x4xbf16, #tpu.memory_space<vmem>>, vector<256x4xbf16>
    %c0_1 = arith.constant 0 : index
    %c0_2 = arith.constant 0 : index
    %1 = vector.load %arg2[%c0_1, %c0_2] : memref<4x64xbf16, #tpu.memory_space<vmem>>, vector<4x64xbf16>
    %cst = arith.constant dense<0.000000e+00> : vector<256x64xf32>
    %2 = tpu.matmul %0, %1, %cst {dimension_numbers = #tpu.dot_dimension_numbers<[1], [0], [0], [1], [0, 0, 1, 1], [], []>} : vector<256x4xbf16>, vector<4x64xbf16>, vector<256x64xf32> -> vector<256x64xf32>
    %c0_3 = arith.constant 0 : index
    %c0_4 = arith.constant 0 : index
    %3 = vector.load %arg3[%c0_3, %c0_4] : memref<1x64xf32, #tpu.memory_space<vmem>>, vector<1x64xf32>
    %4 = vector.broadcast %3 : vector<1x64xf32> to vector<256x64xf32>
    %5 = arith.addf %2, %4 : vector<256x64xf32>
    %cst_5 = arith.constant 0.000000e+00 : f32
    %6 = vector.broadcast %cst_5 : f32 to vector<256x64xf32>
    %7 = arith.maximumf %5, %6 : vector<256x64xf32>
    %8 = arith.truncf %7 : vector<256x64xf32> to vector<256x64xbf16>
    %c0_6 = arith.constant 0 : index
    %c0_7 = arith.constant 0 : index
    %9 = vector.load %arg4[%c0_6, %c0_7] : memref<64x128xbf16, #tpu.memory_space<vmem>>, vector<64x128xbf16>
    %cst_8 = arith.constant dense<0.000000e+00> : vector<256x128xf32>
    %10 = tpu.matmul %8, %9, %cst_8 {dimension_numbers = #tpu.dot_dimension_numbers<[1], [0], [0], [1], [0, 0, 1, 1], [], []>} : vector<256x64xbf16>, vector<64x128xbf16>, vector<256x128xf32> -> vector<256x128xf32>
    %c0_9 = arith.constant 0 : index
    %c0_10 = arith.constant 0 : index
    %11 = vector.load %arg5[%c0_9, %c0_10] : memref<1x128xf32, #tpu.memory_space<vmem>>, vector<1x128xf32>
    %12 = vector.broadcast %11 : vector<1x128xf32> to vector<256x128xf32>
    %13 = arith.addf %10, %12 : vector<256x128xf32>
    %c0_11 = arith.constant 0 : index
    %c0_12 = arith.constant 0 : index
    %14 = vector.load %arg6[%c0_11, %c0_12] : memref<256x128xf32, #tpu.memory_space<vmem>>, vector<256x128xf32>
    tpu.vector_store %arg6[%c0_11, %c0_12], %13 {strides = array<i32>} : memref<256x128xf32, #tpu.memory_space<vmem>>, vector<256x128xf32>,
    return
  }
  func.func @transform_0(%arg0: i32) -> (i32, i32) {
    %c0_i32 = arith.constant 0 : i32
    %c0_i32_0 = arith.constant 0 : i32
    return %arg0, %c0_i32 : i32, i32
  }
  func.func @transform_1(%arg0: i32) -> (i32, i32) {
    %c0_i32 = arith.constant 0 : i32
    %c0_i32_0 = arith.constant 0 : i32
    %c0_i32_1 = arith.constant 0 : i32
    return %c0_i32, %c0_i32_0 : i32, i32
  }
  func.func @transform_2(%arg0: i32) -> (i32, i32) {
    %c0_i32 = arith.constant 0 : i32
    %c0_i32_0 = arith.constant 0 : i32
    %c0_i32_1 = arith.constant 0 : i32
    return %c0_i32, %c0_i32_0 : i32, i32
  }
  func.func @transform_3(%arg0: i32) -> (i32, i32) {
    %c0_i32 = arith.constant 0 : i32
    %c0_i32_0 = arith.constant 0 : i32
    %c0_i32_1 = arith.constant 0 : i32
    return %c0_i32, %c0_i32_0 : i32, i32
  }
  func.func @transform_4(%arg0: i32) -> (i32, i32) {
    %c0_i32 = arith.constant 0 : i32
    %c0_i32_0 = arith.constant 0 : i32
    %c0_i32_1 = arith.constant 0 : i32
    return %c0_i32, %c0_i32_0 : i32, i32
  }
  func.func @transform_5(%arg0: i32) -> (i32, i32) {
    %c0_i32 = arith.constant 0 : i32
    %c0_i32_0 = arith.constant 0 : i32
    return %arg0, %c0_i32 : i32, i32
  }
}

</mosaic_0001>

<bundles_post_ra>
// kernel: dqn_forward.1
= control target key start
LH: loop header
LB: loop body
LE: loop exit
PB: predicated region body
PF: predicated region fallthrough
CT: control target
= control target key end

     0   :  { %vm187_vm0 = vcmask 1041408   ;;  %vm138_vm1 = vcmask 31744   ;;  %vm364_vm2 = vcmask 523264   ;;  %s972_s1 = inlined_call_operand.vmem [shape: bf16[4,64], index: 1, kind: input, shape index: {}]   ;;  %s973_s0 = inlined_call_operand.vmem [shape: bf16[256,4], index: 0, kind: input, shape index: {}]   ;;  %s974_s2 = inlined_call_operand.vmem [shape: f32[1,64], index: 2, kind: input, shape index: {}]   ;;  %s975_s3 = inlined_call_operand.vmem [shape: bf16[64,128], index: 3, kind: input, shape index: {}]   ;;  %s976_s4 = inlined_call_operand.vmem [shape: f32[1,128], index: 4, kind: input, shape index: {}]   ;;  %s977_s5 = inlined_call_operand.vmem [shape: f32[256,128], index: 5, kind: output, shape index: {}]  }
   0x1   :  { %v53_v0 = vld [vmem:[%s972_s1] sm:$0x3]  ;;  %v651_v3 = vld [vmem:[%s973_s0 + $0x8] sm:$0xff]  ;;  %v652_v4 = vld [vmem:[%s973_s0 + $0x10] sm:$0xff] }
   0x2   :  { %v189_v1 = vsel %vm187_vm0, %v53_v0, 0  ;;  %v650_v2 = vld [vmem:[%s973_s0] sm:$0xff]  ;;  %v653_v5 = vld [vmem:[%s973_s0 + $0x18] sm:$0xff]  ;;  %v655_v7 = vld [vmem:[%s973_s0 + $0x28] sm:$0xff] }
   0x3   :  { %198 = vmatpush.bf16.msra.mxu0 %v189_v1  ;;  %670 = vmatpush.bf16.msra.mxu3 %v189_v1  ;;  %v654_v6 = vld [vmem:[%s973_s0 + $0x20] sm:$0xff]  ;;  %v669_v8 = vld [vmem:[%s975_s3 + $0x18] sm:$0xff]  ;;  %v656_v9 = vld [vmem:[%s973_s0 + $0x30] sm:$0xff] }
   0x4   :  { %417 = vmatpush.bf16.msra.mxu1 %v669_v8  ;;  %671 = vmatpush.bf16.msra.mxu2 %v669_v8  ;;  %v668_v10 = vld [vmem:[%s975_s3 + $0x10] sm:$0xff]  ;;  %v659_v11 = vld [vmem:[%s973_s0 + $0x48] sm:$0xff]  ;;  %v666_v13 = vld [vmem:[%s975_s3] sm:$0xff] }
   0x5   :  { %v667_v12 = vld [vmem:[%s975_s3 + $0x8] sm:$0xff]  ;;  %v657_v14 = vld [vmem:[%s973_s0 + $0x38] sm:$0xff]  ;;  %v660_v15 = vld [vmem:[%s973_s0 + $0x50] sm:$0xff] }
   0x6   :  { %602 = vmatmul.msk.bf16.vlgmr.msra.gmra.mxu0 %vm138_vm1, %v650_v2  ;;  %611 = vmatmul.msk.bf16.vlgmr.msra.gmra.mxu3 %vm138_vm1, %v659_v11  ;;  %v658_v16 = vld [vmem:[%s973_s0 + $0x40] sm:$0xff]  ;;  %v661_v19 = vld [vmem:[%s973_s0 + $0x58] sm:$0xff]  ;;  %v663_v35 = vld [vmem:[%s973_s0 + $0x68] sm:$0xff] }
   0x7   :  { %v768_v18 = vld [vmem:[%s974_s2] ss:$0 sm:$0xff]  ;;  %v664_v43 = vld [vmem:[%s973_s0 + $0x70] sm:$0xff]  ;;  %v665_v51 = vld [vmem:[%s973_s0 + $0x78] sm:$0xff] }
   0x8   :  { %418 = vmatpush.bf16.msra.mxu1 %v668_v10  ;;  %672 = vmatpush.bf16.msra.mxu2 %v668_v10  ;;  %v662_v27 = vld [vmem:[%s973_s0 + $0x60] sm:$0xff] }
   0xc   :  { %419 = vmatpush.bf16.msra.mxu1 %v667_v12  ;;  %673 = vmatpush.bf16.msra.mxu2 %v667_v12 }
  0x10   :  { %420 = vmatpush.bf16.msra.mxu1 %v666_v13  ;;  %674 = vmatpush.bf16.msra.mxu2 %v666_v13 }
  0x16   :  { %603 = vmatmul.msk.bf16.gmra.mxu0 %vm138_vm1, %v651_v3  ;;  %612 = vmatmul.msk.bf16.gmra.mxu3 %vm138_vm1, %v660_v15 }
  0x26   :  { %604 = vmatmul.msk.bf16.gmra.mxu0 %vm138_vm1, %v652_v4  ;;  %613 = vmatmul.msk.bf16.gmra.mxu3 %vm138_vm1, %v661_v19 }
  0x36   :  { %605 = vmatmul.msk.bf16.gmra.mxu0 %vm138_vm1, %v653_v5  ;;  %614 = vmatmul.msk.bf16.gmra.mxu3 %vm138_vm1, %v662_v27 }
  0x46   :  { %606 = vmatmul.msk.bf16.gmra.mxu0 %vm138_vm1, %v654_v6  ;;  %615 = vmatmul.msk.bf16.gmra.mxu3 %vm138_vm1, %v663_v35 }
  0x56   :  { %607 = vmatmul.msk.bf16.gmra.mxu0 %vm138_vm1, %v655_v7  ;;  %616 = vmatmul.msk.bf16.gmra.mxu3 %vm138_vm1, %v664_v43 }
  0x66   :  { %608 = vmatmul.msk.bf16.gmra.mxu0 %vm138_vm1, %v656_v9  ;;  %617 = vmatmul.msk.bf16.gmra.mxu3 %vm138_vm1, %v665_v51 }
  0x76   :  { %609 = vmatmul.msk.bf16.gmra.mxu0 %vm138_vm1, %v657_v14 }
  0x83   :  { %v200_v17 = vpop.f32.mrf.mxu0 }
  0x84   :  { %v201_v20 = vadd.f32 %v768_v18, %v200_v17 }
  0x86   :  { %610 = vmatmul.msk.bf16.gmra.mxu0 %vm138_vm1, %v658_v16  ;;  %v280_v23 = vmax.f32 %v201_v20, 0.0 }
  0x89   :  { %v245_v9 = vpop.f32.mrf.mxu3 }
  0x8b   :  { %v202_v21 = vpop.f32.mrf.mxu0 }
  0x8c   :  { %v203_v22 = vadd.f32 %v768_v18, %v202_v21 }
  0x8e   :  { %v281_v24 = vmax.f32 %v203_v22, 0.0 }
  0x90   :  { %v312_v25 = vpack.c.bf16 %v281_v24, %v280_v23  ;;  %v820_v23 = vld [vmem:[%s976_s4] ss:$0 sm:$0xff] }
  0x91   :  { %v247_v13 = vpop.f32.mrf.mxu3 }
  0x92   :  { %634 = vmatmul.msk.bf16.vlgmr.msra.gmra.mxu1 %vm364_vm2, %v312_v25 }
  0x93   :  { %v205_v26 = vpop.f32.mrf.mxu0 }
  0x94   :  { %v206_v28 = vadd.f32 %v768_v18, %v205_v26 }
  0x96   :  { %v282_v31 = vmax.f32 %v206_v28, 0.0 }
  0x99   :  { %v250_v19 = vpop.f32.mrf.mxu3 }
  0x9b   :  { %v207_v29 = vpop.f32.mrf.mxu0 }
  0x9c   :  { %v208_v30 = vadd.f32 %v768_v18, %v207_v29 }
  0x9e   :  { %v283_v32 = vmax.f32 %v208_v30, 0.0 }
  0xa0   :  { %v313_v33 = vpack.c.bf16 %v283_v32, %v282_v31  ;;  %v246_v31 = vadd.f32 %v768_v18, %v245_v9  ;;  %v248_v32 = vadd.f32 %v768_v18, %v247_v13 }
  0xa1   :  { %v252_v29 = vpop.f32.mrf.mxu3 }
  0xa2   :  { %635 = vmatmul.msk.bf16.gmra.mxu1 %vm364_vm2, %v313_v33  ;;  %v298_v35 = vmax.f32 %v246_v31, 0.0  ;;  %v253_v43 = vadd.f32 %v768_v18, %v252_v29 }
  0xa3   :  { %v210_v34 = vpop.f32.mrf.mxu0 }
  0xa4   :  { %v211_v36 = vadd.f32 %v768_v18, %v210_v34 }
  0xa6   :  { %v284_v39 = vmax.f32 %v211_v36, 0.0  ;;  %v299_v36 = vmax.f32 %v248_v32, 0.0 }
  0xa9   :  { %v255_v34 = vpop.f32.mrf.mxu3 }
  0xab   :  { %v212_v37 = vpop.f32.mrf.mxu0 }
  0xac   :  { %v213_v38 = vadd.f32 %v768_v18, %v212_v37 }
  0xae   :  { %v285_v40 = vmax.f32 %v213_v38, 0.0  ;;  %v321_v38 = vpack.c.bf16 %v299_v36, %v298_v35 }
  0xb0   :  { %v314_v41 = vpack.c.bf16 %v285_v40, %v284_v39 }
  0xb1   :  { %v257_v40 = vpop.f32.mrf.mxu3 }
  0xb2   :  { %636 = vmatmul.msk.bf16.gmra.mxu1 %vm364_vm2, %v314_v41 }
  0xb3   :  { %v215_v42 = vpop.f32.mrf.mxu0 }
  0xb4   :  { %v216_v44 = vadd.f32 %v768_v18, %v215_v42  ;;  %v251_v42 = vadd.f32 %v768_v18, %v250_v19 }
  0xb6   :  { %v286_v47 = vmax.f32 %v216_v44, 0.0 }
  0xbb   :  { %v217_v45 = vpop.f32.mrf.mxu0 }
  0xbc   :  { %v218_v46 = vadd.f32 %v768_v18, %v217_v45  ;;  %v300_v45 = vmax.f32 %v251_v42, 0.0 }
  0xbe   :  { %v287_v48 = vmax.f32 %v218_v46, 0.0  ;;  %v301_v46 = vmax.f32 %v253_v43, 0.0 }
  0xc0   :  { %v315_v49 = vpack.c.bf16 %v287_v48, %v286_v47  ;;  %v260_v48 = vpop.f32.mrf.mxu3 }
  0xc2   :  { %637 = vmatmul.msk.bf16.gmra.mxu1 %vm364_vm2, %v315_v49  ;;  %v322_v49 = vpack.c.bf16 %v301_v46, %v300_v45 }
  0xc3   :  { %v220_v50 = vpop.f32.mrf.mxu0 }
  0xc4   :  { %v221_v52 = vadd.f32 %v768_v18, %v220_v50 }
  0xc6   :  { %v288_v55 = vmax.f32 %v221_v52, 0.0  ;;  %v256_v52 = vadd.f32 %v768_v18, %v255_v34 }
  0xcb   :  { %v222_v53 = vpop.f32.mrf.mxu0 }
  0xcc   :  { %v223_v54 = vadd.f32 %v768_v18, %v222_v53  ;;  %v258_v53 = vadd.f32 %v768_v18, %v257_v40 }
  0xce   :  { %v289_v56 = vmax.f32 %v223_v54, 0.0 }
  0xd0   :  { %v316_v57 = vpack.c.bf16 %v289_v56, %v288_v55  ;;  %v262_v55 = vpop.f32.mrf.mxu3  ;;  %v302_v56 = vmax.f32 %v256_v52, 0.0 }
  0xd2   :  { %638 = vmatmul.msk.bf16.gmra.mxu1 %vm364_vm2, %v316_v57  ;;  %v303_v57 = vmax.f32 %v258_v53, 0.0 }
  0xd3   :  { %v225_v58 = vpop.f32.mrf.mxu0 }
  0xd4   :  { %v226_v59 = vadd.f32 %v768_v18, %v225_v58 }
  0xd6   :  { %v290_v62 = vmax.f32 %v226_v59, 0.0  ;;  %v323_v59 = vpack.c.bf16 %v303_v57, %v302_v56 }
  0xdb   :  { %v227_v60 = vpop.f32.mrf.mxu0 }
  0xdc   :  { %v228_v61 = vadd.f32 %v768_v18, %v227_v60 }
  0xde   :  { %v291_v63 = vmax.f32 %v228_v61, 0.0  ;;  %v265_v61 = vpop.f32.mrf.mxu3 }
  0xe0   :  { %v317_v0 = vpack.c.bf16 %v291_v63, %v290_v62  ;;  %v261_v63 = vadd.f32 %v768_v18, %v260_v48 }
  0xe2   :  { %639 = vmatmul.msk.bf16.gmra.mxu1 %vm364_vm2, %v317_v0  ;;  %v263_v0 = vadd.f32 %v768_v18, %v262_v55 }
  0xe3   :  { %v230_v1 = vpop.f32.mrf.mxu0 }
  0xe4   :  { %v231_v2 = vadd.f32 %v768_v18, %v230_v1 }
  0xe6   :  { %v292_v5 = vmax.f32 %v231_v2, 0.0  ;;  %v304_v2 = vmax.f32 %v261_v63, 0.0 }
  0xeb   :  { %v232_v3 = vpop.f32.mrf.mxu0 }
  0xec   :  { %v233_v4 = vadd.f32 %v768_v18, %v232_v3  ;;  %v305_v3 = vmax.f32 %v263_v0, 0.0 }
  0xee   :  { %v293_v6 = vmax.f32 %v233_v4, 0.0  ;;  %v267_v4 = vpop.f32.mrf.mxu3 }
  0xf0   :  { %v318_v7 = vpack.c.bf16 %v293_v6, %v292_v5  ;;  %v324_v6 = vpack.c.bf16 %v305_v3, %v304_v2 }
  0xf2   :  { %640 = vmatmul.msk.bf16.gmra.mxu1 %vm364_vm2, %v318_v7 }
  0xf3   :  { %v235_v8 = vpop.f32.mrf.mxu0 }
  0xf4   :  { %v236_v10 = vadd.f32 %v768_v18, %v235_v8 }
  0xf6   :  { %v294_v14 = vmax.f32 %v236_v10, 0.0  ;;  %v270_v9 = vpop.f32.mrf.mxu3  ;;  %v266_v10 = vadd.f32 %v768_v18, %v265_v61 }
  0xf8   :  { %v306_v13 = vmax.f32 %v266_v10, 0.0 }
  0xfb   :  { %v237_v11 = vpop.f32.mrf.mxu0 }
  0xfc   :  { %v238_v12 = vadd.f32 %v768_v18, %v237_v11  ;;  %v268_v11 = vadd.f32 %v768_v18, %v267_v4 }
  0xfe   :  { %v295_v15 = vmax.f32 %v238_v12, 0.0  ;;  %v272_v19 = vpop.f32.mrf.mxu3 }
 0x100   :  { %v319_v16 = vpack.c.bf16 %v295_v15, %v294_v14  ;;  %v307_v14 = vmax.f32 %v268_v11, 0.0 }
 0x102   :  { %641 = vmatmul.msk.bf16.gmra.mxu1 %vm364_vm2, %v319_v16  ;;  %v325_v16 = vpack.c.bf16 %v307_v14, %v306_v13 }
 0x103   :  { %v240_v17 = vpop.f32.mrf.mxu0 }
 0x104   :  { %v241_v20 = vadd.f32 %v768_v18, %v240_v17 }
 0x106   :  { %v296_v24 = vmax.f32 %v241_v20, 0.0 }
 0x10b   :  { %v242_v21 = vpop.f32.mrf.mxu0 }
 0x10c   :  { %v243_v22 = vadd.f32 %v768_v18, %v242_v21  ;;  %v271_v21 = vadd.f32 %v768_v18, %v270_v9 }
 0x10e   :  { %v297_v25 = vmax.f32 %v243_v22, 0.0  ;;  %v273_v22 = vadd.f32 %v768_v18, %v272_v19 }
 0x10f   :  { %v422_v26 = vpop.f32.mrf.mxu1 }
 0x110   :  { %v320_v27 = vpack.c.bf16 %v297_v25, %v296_v24  ;;  %v423_v28 = vadd.f32 %v820_v23, %v422_v26  ;;  %v275_v25 = vpop.f32.mrf.mxu3  ;;  %v308_v26 = vmax.f32 %v271_v21, 0.0 }
 0x112   :  { %502 = vst [vmem:[%s977_s5] sm:$0xff] %v423_v28  ;;  %642 = vmatmul.msk.bf16.vlgmr.msra.gmra.mxu2 %vm364_vm2, %v320_v27  ;;  %v309_v27 = vmax.f32 %v273_v22, 0.0 }
 0x114   :  { %v326_v29 = vpack.c.bf16 %v309_v27, %v308_v26 }
 0x117   :  { %v424_v30 = vpop.f32.mrf.mxu1 }
 0x118   :  { %v425_v33 = vadd.f32 %v820_v23, %v424_v30  ;;  %v277_v31 = vpop.f32.mrf.mxu3 }
 0x119   :  { %v278_v34 = vadd.f32 %v768_v18, %v277_v31 }
 0x11a   :  { %503 = vst [vmem:[%s977_s5 + $0x8] sm:$0xff] %v425_v33  ;;  %v276_v33 = vadd.f32 %v768_v18, %v275_v25 }
 0x11c   :  { %v310_v36 = vmax.f32 %v276_v33, 0.0 }
 0x11f   :  { %v427_v37 = vpop.f32.mrf.mxu1 }
 0x120   :  { %v428_v39 = vadd.f32 %v820_v23, %v427_v37  ;;  %v311_v37 = vmax.f32 %v278_v34, 0.0 }
 0x122   :  { %504 = vst [vmem:[%s977_s5 + $0x10] sm:$0xff] %v428_v39  ;;  %643 = vmatmul.msk.bf16.gmra.mxu2 %vm364_vm2, %v321_v38  ;;  %v327_v39 = vpack.c.bf16 %v311_v37, %v310_v36 }
 0x127   :  { %v429_v41 = vpop.f32.mrf.mxu1 }
 0x128   :  { %v430_v44 = vadd.f32 %v820_v23, %v429_v41 }
 0x12a   :  { %505 = vst [vmem:[%s977_s5 + $0x18] sm:$0xff] %v430_v44 }
 0x12f   :  { %v432_v47 = vpop.f32.mrf.mxu1 }
 0x130   :  { %v433_v50 = vadd.f32 %v820_v23, %v432_v47 }
 0x132   :  { %506 = vst [vmem:[%s977_s5 + $0x20] sm:$0xff] %v433_v50  ;;  %644 = vmatmul.msk.bf16.gmra.mxu2 %vm364_vm2, %v322_v49 }
 0x137   :  { %v434_v51 = vpop.f32.mrf.mxu1 }
 0x138   :  { %v435_v54 = vadd.f32 %v820_v23, %v434_v51 }
 0x13a   :  { %507 = vst [vmem:[%s977_s5 + $0x28] sm:$0xff] %v435_v54 }
 0x13f   :  { %v437_v58 = vpop.f32.mrf.mxu1 }
 0x140   :  { %v438_v60 = vadd.f32 %v820_v23, %v437_v58 }
 0x142   :  { %508 = vst [vmem:[%s977_s5 + $0x30] sm:$0xff] %v438_v60  ;;  %645 = vmatmul.msk.bf16.gmra.mxu2 %vm364_vm2, %v323_v59 }
 0x147   :  { %v439_v62 = vpop.f32.mrf.mxu1 }
 0x148   :  { %v440_v1 = vadd.f32 %v820_v23, %v439_v62 }
 0x14a   :  { %509 = vst [vmem:[%s977_s5 + $0x38] sm:$0xff] %v440_v1 }
 0x14f   :  { %v442_v5 = vpop.f32.mrf.mxu1 }
 0x150   :  { %v443_v7 = vadd.f32 %v820_v23, %v442_v5 }
 0x152   :  { %510 = vst [vmem:[%s977_s5 + $0x40] sm:$0xff] %v443_v7  ;;  %646 = vmatmul.msk.bf16.gmra.mxu2 %vm364_vm2, %v324_v6 }
 0x157   :  { %v444_v8 = vpop.f32.mrf.mxu1 }
 0x158   :  { %v445_v12 = vadd.f32 %v820_v23, %v444_v8 }
 0x15a   :  { %511 = vst [vmem:[%s977_s5 + $0x48] sm:$0xff] %v445_v12 }
 0x15f   :  { %v447_v15 = vpop.f32.mrf.mxu1 }
 0x160   :  { %v448_v17 = vadd.f32 %v820_v23, %v447_v15 }
 0x162   :  { %512 = vst [vmem:[%s977_s5 + $0x50] sm:$0xff] %v448_v17  ;;  %647 = vmatmul.msk.bf16.gmra.mxu2 %vm364_vm2, %v325_v16 }
 0x167   :  { %v449_v20 = vpop.f32.mrf.mxu1 }
 0x168   :  { %v450_v24 = vadd.f32 %v820_v23, %v449_v20 }
 0x16a   :  { %513 = vst [vmem:[%s977_s5 + $0x58] sm:$0xff] %v450_v24 }
 0x16f   :  { %v452_v28 = vpop.f32.mrf.mxu1 }
 0x170   :  { %v453_v30 = vadd.f32 %v820_v23, %v452_v28 }
 0x172   :  { %514 = vst [vmem:[%s977_s5 + $0x60] sm:$0xff] %v453_v30  ;;  %648 = vmatmul.msk.bf16.gmra.mxu2 %vm364_vm2, %v326_v29 }
 0x177   :  { %v454_v32 = vpop.f32.mrf.mxu1 }
 0x178   :  { %v455_v35 = vadd.f32 %v820_v23, %v454_v32 }
 0x17a   :  { %515 = vst [vmem:[%s977_s5 + $0x68] sm:$0xff] %v455_v35 }
 0x17f   :  { %v457_v38 = vpop.f32.mrf.mxu1 }
 0x180   :  { %v458_v40 = vadd.f32 %v820_v23, %v457_v38 }
 0x182   :  { %516 = vst [vmem:[%s977_s5 + $0x70] sm:$0xff] %v458_v40  ;;  %649 = vmatmul.msk.bf16.gmra.mxu2 %vm364_vm2, %v327_v39 }
 0x187   :  { %v459_v41 = vpop.f32.mrf.mxu1 }
 0x188   :  { %v460_v18 = vadd.f32 %v820_v23, %v459_v41 }
 0x18a   :  { %517 = vst [vmem:[%s977_s5 + $0x78] sm:$0xff] %v460_v18 }
 0x195   :  { %v462_v42 = vpop.f32.mrf.mxu2 }
 0x196   :  { %v463_v43 = vadd.f32 %v820_v23, %v462_v42 }
 0x198   :  { %518 = vst [vmem:[%s977_s5 + $0x80] sm:$0xff] %v463_v43 }
 0x19d   :  { %v464_v44 = vpop.f32.mrf.mxu2 }
 0x19e   :  { %v465_v45 = vadd.f32 %v820_v23, %v464_v44 }
 0x1a0   :  { %519 = vst [vmem:[%s977_s5 + $0x88] sm:$0xff] %v465_v45 }
 0x1a5   :  { %v467_v46 = vpop.f32.mrf.mxu2 }
 0x1a6   :  { %v468_v47 = vadd.f32 %v820_v23, %v467_v46 }
 0x1a8   :  { %520 = vst [vmem:[%s977_s5 + $0x90] sm:$0xff] %v468_v47 }
 0x1ad   :  { %v469_v48 = vpop.f32.mrf.mxu2 }
 0x1ae   :  { %v470_v49 = vadd.f32 %v820_v23, %v469_v48 }
 0x1b0   :  { %521 = vst [vmem:[%s977_s5 + $0x98] sm:$0xff] %v470_v49 }
 0x1b5   :  { %v472_v50 = vpop.f32.mrf.mxu2 }
 0x1b6   :  { %v473_v51 = vadd.f32 %v820_v23, %v472_v50 }
 0x1b8   :  { %522 = vst [vmem:[%s977_s5 + $0xa0] sm:$0xff] %v473_v51 }
 0x1bd   :  { %v474_v52 = vpop.f32.mrf.mxu2 }
 0x1be   :  { %v475_v53 = vadd.f32 %v820_v23, %v474_v52 }
 0x1c0   :  { %523 = vst [vmem:[%s977_s5 + $0xa8] sm:$0xff] %v475_v53 }
 0x1c5   :  { %v477_v54 = vpop.f32.mrf.mxu2 }
 0x1c6   :  { %v478_v55 = vadd.f32 %v820_v23, %v477_v54 }
 0x1c8   :  { %524 = vst [vmem:[%s977_s5 + $0xb0] sm:$0xff] %v478_v55 }
 0x1cd   :  { %v479_v56 = vpop.f32.mrf.mxu2 }
 0x1ce   :  { %v480_v57 = vadd.f32 %v820_v23, %v479_v56 }
 0x1d0   :  { %525 = vst [vmem:[%s977_s5 + $0xb8] sm:$0xff] %v480_v57 }
 0x1d5   :  { %v482_v58 = vpop.f32.mrf.mxu2 }
 0x1d6   :  { %v483_v59 = vadd.f32 %v820_v23, %v482_v58 }
 0x1d8   :  { %526 = vst [vmem:[%s977_s5 + $0xc0] sm:$0xff] %v483_v59 }
 0x1dd   :  { %v484_v60 = vpop.f32.mrf.mxu2 }
 0x1de   :  { %v485_v61 = vadd.f32 %v820_v23, %v484_v60 }
 0x1e0   :  { %527 = vst [vmem:[%s977_s5 + $0xc8] sm:$0xff] %v485_v61 }
 0x1e5   :  { %v487_v62 = vpop.f32.mrf.mxu2 }
 0x1e6   :  { %v488_v63 = vadd.f32 %v820_v23, %v487_v62 }
 0x1e8   :  { %528 = vst [vmem:[%s977_s5 + $0xd0] sm:$0xff] %v488_v63 }
 0x1ed   :  { %v489_v0 = vpop.f32.mrf.mxu2 }
 0x1ee   :  { %v490_v1 = vadd.f32 %v820_v23, %v489_v0 }
 0x1f0   :  { %529 = vst [vmem:[%s977_s5 + $0xd8] sm:$0xff] %v490_v1 }
 0x1f5   :  { %v492_v2 = vpop.f32.mrf.mxu2 }
 0x1f6   :  { %v493_v3 = vadd.f32 %v820_v23, %v492_v2 }
 0x1f8   :  { %530 = vst [vmem:[%s977_s5 + $0xe0] sm:$0xff] %v493_v3 }
 0x1fd   :  { %v494_v4 = vpop.f32.mrf.mxu2 }
 0x1fe   :  { %v495_v5 = vadd.f32 %v820_v23, %v494_v4 }
 0x200   :  { %531 = vst [vmem:[%s977_s5 + $0xe8] sm:$0xff] %v495_v5 }
 0x205   :  { %v497_v6 = vpop.f32.mrf.mxu2 }
 0x206   :  { %v498_v7 = vadd.f32 %v820_v23, %v497_v6 }
 0x208   :  { %532 = vst [vmem:[%s977_s5 + $0xf0] sm:$0xff] %v498_v7 }
 0x20d   :  { %v499_v8 = vpop.f32.mrf.mxu2 }
 0x20e   :  { %v500_v9 = vadd.f32 %v820_v23, %v499_v8 }
 0x210   :  { %533 = vst [vmem:[%s977_s5 + $0xf8] sm:$0xff] %v500_v9 }

</bundles_post_ra>
